<compile_context>
chip_gen: v5e
topology: v5e:2x2
jax: 0.10.0
libtpu: 0.0.40
codegen_flags: <defaults>
</compile_context>

<pallas_src>
import jax
import jax.numpy as jnp
from jax.experimental import pallas as pl
from jax.experimental.pallas import tpu as pltpu

_LANE = 128


def _round_up(x, m):
    return ((x + m - 1) // m) * m


def _pick_tile_n(n, c_verb, c_target):
    """Rows-per-step tile (batch maps to lanes).  Keeps the double-buffered
    working set of both logit tiles well under every generation's scoped VMEM
    (v7x: 64 MiB physical / 32 MiB scoped default)."""
    budget_bytes = 8 * 1024 * 1024
    bytes_per_row = 2 * 4 * (c_verb + c_target + 8)  # 2 buffers, f32 logits + label/w_y/out rows
    t = budget_bytes // bytes_per_row
    t = max(_LANE, (t // _LANE) * _LANE)
    t = min(t, 1024)                  # 512-1024-wide tiles already reach ~85% of HBM roofline
    t = min(t, _round_up(n, _LANE))   # do not tile past the (padded) batch
    return t


def _partial_weighted_nll(logits, labels, w_y):
    """Per-row w[y]*NLL for one tile. logits (C, T); labels (1, T) i32; w_y (1, T) f32."""
    x = logits.astype(jnp.float32)                               # f32 math on every generation
    m = jnp.max(x, axis=0, keepdims=True)                        # (1, T)
    lse = jnp.log(jnp.sum(jnp.exp(x - m), axis=0, keepdims=True)) + m
    cls = jax.lax.broadcasted_iota(jnp.int32, x.shape, 0)        # (C, T)
    onehot = (cls == labels).astype(jnp.float32)
    logit_y = jnp.sum(x * onehot, axis=0, keepdims=True)         # (1, T)
    nll = lse - logit_y
    return w_y * nll                                             # (1, T)


def _multitask_loss_kernel(vlog_ref, vlab_ref, vwy_ref,
                           tlog_ref, tlab_ref, twy_ref,
                           vnum_ref, tnum_ref):
    vnum_ref[...] = _partial_weighted_nll(vlog_ref[...], vlab_ref[...], vwy_ref[...])
    tnum_ref[...] = _partial_weighted_nll(tlog_ref[...], tlab_ref[...], twy_ref[...])


def multitask_loss(verb_preds, target_preds, verb_labels, target_labels,
                   verb_weights=None, target_weights=None, *, tile_n=None):
    """loss = CE_w(verb_preds, verb_labels) + CE_w(target_preds, target_labels),
    matching torch.nn.CrossEntropyLoss(weight=...) weighted-mean reduction
    (weights=None -> plain cross entropy, the config.use_wce=False branch)."""
    # TODO(synk): PyTorch's default ignore_index=-100 is not handled; labels are
    # assumed to be valid class indices (as in the original training loop).
    N, Cv = verb_preds.shape
    N_t, Ct = target_preds.shape
    assert N == N_t, "verb/target batches must match"

    if tile_n is None:
        tile_n = _pick_tile_n(N, Cv, Ct)
    assert tile_n % _LANE == 0
    n_pad = _round_up(max(N, 1), tile_n)
    grid = n_pad // tile_n

    def prep(logits, labels, weights, c):
        labels = labels.astype(jnp.int32)
        w = jnp.ones((c,), jnp.float32) if weights is None else weights.astype(jnp.float32)
        w_y = w[labels]                          # hoisted class-weight gather, (N,)
        den = jnp.sum(w_y)                       # weighted-mean denominator
        logits_t = jnp.transpose(logits)         # (C, N): batch -> lanes (lane-dense)
        pad = n_pad - N
        if pad:
            logits_t = jnp.pad(logits_t, ((0, 0), (0, pad)))
            labels = jnp.pad(labels, (0, pad))
            w_y = jnp.pad(w_y, (0, pad))         # padded rows carry zero weight
        return logits_t, labels.reshape(1, n_pad), w_y.reshape(1, n_pad), den

    vlog, vlab, vwy, vden = prep(verb_preds, verb_labels, verb_weights, Cv)
    tlog, tlab, twy, tden = prep(target_preds, target_labels, target_weights, Ct)

    def col_spec(c):  # full class axis resident, tile the batch (lane) axis
        return pl.BlockSpec((c, tile_n), lambda i: (0, i))

    row_spec = pl.BlockSpec((1, tile_n), lambda i: (0, i))

    vnum, tnum = pl.pallas_call(
        _multitask_loss_kernel,
        out_shape=(jax.ShapeDtypeStruct((1, n_pad), jnp.float32),
                   jax.ShapeDtypeStruct((1, n_pad), jnp.float32)),
        grid=(grid,),
        in_specs=[col_spec(Cv), row_spec, row_spec,
                  col_spec(Ct), row_spec, row_spec],
        out_specs=(row_spec, row_spec),
        compiler_params=pltpu.CompilerParams(
            dimension_semantics=("parallel",),
            vmem_limit_bytes=32 * 1024 * 1024),
    )(vlog, vlab, vwy, tlog, tlab, twy)

    # Tiny O(N) epilogue: padded rows contribute exactly 0 (zero weight).
    loss_verb = jnp.sum(vnum) / vden
    loss_target = jnp.sum(tnum) / tden
    return loss_verb + loss_target


def make_class_weights(key, num_classes, scaling_factor=0.5):
    """Deterministic stand-in for the config.use_wce init path:
    synthetic class frequencies -> 1/freq**alpha -> normalized weights."""
    # TODO(synk): the original derives per-verb/per-target frequencies from
    # verbtarget mapping matrices; here synthetic frequencies stand in for them.
    freq = jax.random.uniform(key, (num_classes,), minval=10.0, maxval=1000.0)
    w = 1.0 / (freq ** scaling_factor)
    return (w / jnp.sum(w)).astype(jnp.float32)


def _ref_ce(logits, labels, w):
    logp = jax.nn.log_softmax(logits.astype(jnp.float32), axis=-1)
    nll = -jnp.take_along_axis(logp, labels[:, None], axis=-1)[:, 0]
    wy = w[labels]
    return jnp.sum(wy * nll) / jnp.sum(wy)


if __name__ == "__main__":
    key = jax.random.PRNGKey(0)
    k1, k2, k3, k4, k5, k6 = jax.random.split(key, 6)

    N = 8            # batch
    NUM_VERB = 10    # verb classes
    NUM_TARGET = 15  # target classes

    verb_preds = jax.random.normal(k1, (N, NUM_VERB), dtype=jnp.float32)
    target_preds = jax.random.normal(k2, (N, NUM_TARGET), dtype=jnp.float32)
    verb_labels = jax.random.randint(k3, (N,), 0, NUM_VERB, dtype=jnp.int32)
    target_labels = jax.random.randint(k4, (N,), 0, NUM_TARGET, dtype=jnp.int32)

    verb_weights = make_class_weights(k5, NUM_VERB)
    target_weights = make_class_weights(k6, NUM_TARGET)

    loss = multitask_loss(verb_preds, target_preds, verb_labels, target_labels,
                          verb_weights, target_weights)
    loss = jax.block_until_ready(loss)
    ref = (_ref_ce(verb_preds, verb_labels, verb_weights)
           + _ref_ce(target_preds, target_labels, target_weights))
    assert jnp.allclose(loss, ref, rtol=1e-5, atol=1e-5), (loss, ref)

    # Second check: non-tile-multiple batch exercising the multi-step grid
    # (padding + per-block partials) path.
    N2 = 300
    vp2 = jax.random.normal(k1, (N2, NUM_VERB), dtype=jnp.float32)
    tp2 = jax.random.normal(k2, (N2, NUM_TARGET), dtype=jnp.float32)
    vl2 = jax.random.randint(k3, (N2,), 0, NUM_VERB, dtype=jnp.int32)
    tl2 = jax.random.randint(k4, (N2,), 0, NUM_TARGET, dtype=jnp.int32)
    loss2 = multitask_loss(vp2, tp2, vl2, tl2, verb_weights, target_weights,
                           tile_n=128)
    loss2 = jax.block_until_ready(loss2)
    ref2 = (_ref_ce(vp2, vl2, verb_weights) + _ref_ce(tp2, tl2, target_weights))
    assert jnp.allclose(loss2, ref2, rtol=1e-5, atol=1e-5), (loss2, ref2)

    print("KERNEL_OK")
</pallas_src>

<mosaic_0001>
module attributes {stable_mosaic.version = 11 : i64} {
  func.func @_multitask_loss_kernel(%arg0: i32, %arg1: memref<10x128xf32, #tpu.memory_space<vmem>>, %arg2: memref<1x128xi32, #tpu.memory_space<vmem>>, %arg3: memref<1x128xf32, #tpu.memory_space<vmem>>, %arg4: memref<15x128xf32, #tpu.memory_space<vmem>>, %arg5: memref<1x128xi32, #tpu.memory_space<vmem>>, %arg6: memref<1x128xf32, #tpu.memory_space<vmem>>, %arg7: memref<1x128xf32, #tpu.memory_space<vmem>>, %arg8: memref<1x128xf32, #tpu.memory_space<vmem>>) attributes {dimension_semantics = [#tpu.dimension_semantics<parallel>], iteration_bounds = array<i64: 1>, scalar_prefetch = 0 : i64, scratch_operands = 0 : i64, tpu.core_type = #tpu.core_type<tc>, window_params = [{transform_indices = @transform_0, window_bounds = array<i64: 10, 128>}, {transform_indices = @transform_1, window_bounds = array<i64: 1, 128>}, {transform_indices = @transform_2, window_bounds = array<i64: 1, 128>}, {transform_indices = @transform_3, window_bounds = array<i64: 15, 128>}, {transform_indices = @transform_4, window_bounds = array<i64: 1, 128>}, {transform_indices = @transform_5, window_bounds = array<i64: 1, 128>}, {transform_indices = @transform_6, window_bounds = array<i64: 1, 128>}, {transform_indices = @transform_7, window_bounds = array<i64: 1, 128>}]} {
    %c0 = arith.constant 0 : index
    %c0_0 = arith.constant 0 : index
    %0 = vector.load %arg1[%c0, %c0_0] : memref<10x128xf32, #tpu.memory_space<vmem>>, vector<10x128xf32>
    %c0_1 = arith.constant 0 : index
    %c0_2 = arith.constant 0 : index
    %1 = vector.load %arg2[%c0_1, %c0_2] : memref<1x128xi32, #tpu.memory_space<vmem>>, vector<1x128xi32>
    %c0_3 = arith.constant 0 : index
    %c0_4 = arith.constant 0 : index
    %2 = vector.load %arg3[%c0_3, %c0_4] : memref<1x128xf32, #tpu.memory_space<vmem>>, vector<1x128xf32>
    %cst = arith.constant dense<0xFF800000> : vector<128xf32>
    %3 = vector.multi_reduction <maximumf>, %0, %cst [0] : vector<10x128xf32> to vector<128xf32>
    %4 = vector.shape_cast %3 : vector<128xf32> to vector<1x128xf32>
    %5 = vector.broadcast %4 : vector<1x128xf32> to vector<10x128xf32>
    %6 = arith.subf %0, %5 : vector<10x128xf32>
    %7 = math.exp %6 : vector<10x128xf32>
    %cst_5 = arith.constant dense<0.000000e+00> : vector<128xf32>
    %8 = vector.multi_reduction <add>, %7, %cst_5 [0] : vector<10x128xf32> to vector<128xf32>
    %9 = vector.shape_cast %8 : vector<128xf32> to vector<1x128xf32>
    %10 = math.log %9 : vector<1x128xf32>
    %11 = arith.addf %10, %4 : vector<1x128xf32>
    %12 = tpu.iota {dimensions = array<i32: 0>} : vector<10x128xi32>
    %13 = vector.broadcast %1 : vector<1x128xi32> to vector<10x128xi32>
    %14 = arith.cmpi eq, %12, %13 : vector<10x128xi32>
    %15 = arith.extui %14 : vector<10x128xi1> to vector<10x128xi32>
    %16 = arith.sitofp %15 : vector<10x128xi32> to vector<10x128xf32>
    %17 = arith.mulf %0, %16 : vector<10x128xf32>
    %cst_6 = arith.constant dense<0.000000e+00> : vector<128xf32>
    %18 = vector.multi_reduction <add>, %17, %cst_6 [0] : vector<10x128xf32> to vector<128xf32>
    %19 = vector.shape_cast %18 : vector<128xf32> to vector<1x128xf32>
    %20 = arith.subf %11, %19 : vector<1x128xf32>
    %21 = arith.mulf %2, %20 : vector<1x128xf32>
    %c0_7 = arith.constant 0 : index
    %c0_8 = arith.constant 0 : index
    %22 = vector.load %arg7[%c0_7, %c0_8] : memref<1x128xf32, #tpu.memory_space<vmem>>, vector<1x128xf32>
    tpu.vector_store %arg7[%c0_7, %c0_8], %21 {strides = array<i32>} : memref<1x128xf32, #tpu.memory_space<vmem>>, vector<1x128xf32>,
    %c0_9 = arith.constant 0 : index
    %c0_10 = arith.constant 0 : index
    %23 = vector.load %arg4[%c0_9, %c0_10] : memref<15x128xf32, #tpu.memory_space<vmem>>, vector<15x128xf32>
    %c0_11 = arith.constant 0 : index
    %c0_12 = arith.constant 0 : index
    %24 = vector.load %arg5[%c0_11, %c0_12] : memref<1x128xi32, #tpu.memory_space<vmem>>, vector<1x128xi32>
    %c0_13 = arith.constant 0 : index
    %c0_14 = arith.constant 0 : index
    %25 = vector.load %arg6[%c0_13, %c0_14] : memref<1x128xf32, #tpu.memory_space<vmem>>, vector<1x128xf32>
    %cst_15 = arith.constant dense<0xFF800000> : vector<128xf32>
    %26 = vector.multi_reduction <maximumf>, %23, %cst_15 [0] : vector<15x128xf32> to vector<128xf32>
    %27 = vector.shape_cast %26 : vector<128xf32> to vector<1x128xf32>
    %28 = vector.broadcast %27 : vector<1x128xf32> to vector<15x128xf32>
    %29 = arith.subf %23, %28 : vector<15x128xf32>
    %30 = math.exp %29 : vector<15x128xf32>
    %cst_16 = arith.constant dense<0.000000e+00> : vector<128xf32>
    %31 = vector.multi_reduction <add>, %30, %cst_16 [0] : vector<15x128xf32> to vector<128xf32>
    %32 = vector.shape_cast %31 : vector<128xf32> to vector<1x128xf32>
    %33 = math.log %32 : vector<1x128xf32>
    %34 = arith.addf %33, %27 : vector<1x128xf32>
    %35 = tpu.iota {dimensions = array<i32: 0>} : vector<15x128xi32>
    %36 = vector.broadcast %24 : vector<1x128xi32> to vector<15x128xi32>
    %37 = arith.cmpi eq, %35, %36 : vector<15x128xi32>
    %38 = arith.extui %37 : vector<15x128xi1> to vector<15x128xi32>
    %39 = arith.sitofp %38 : vector<15x128xi32> to vector<15x128xf32>
    %40 = arith.mulf %23, %39 : vector<15x128xf32>
    %cst_17 = arith.constant dense<0.000000e+00> : vector<128xf32>
    %41 = vector.multi_reduction <add>, %40, %cst_17 [0] : vector<15x128xf32> to vector<128xf32>
    %42 = vector.shape_cast %41 : vector<128xf32> to vector<1x128xf32>
    %43 = arith.subf %34, %42 : vector<1x128xf32>
    %44 = arith.mulf %25, %43 : vector<1x128xf32>
    %c0_18 = arith.constant 0 : index
    %c0_19 = arith.constant 0 : index
    %45 = vector.load %arg8[%c0_18, %c0_19] : memref<1x128xf32, #tpu.memory_space<vmem>>, vector<1x128xf32>
    tpu.vector_store %arg8[%c0_18, %c0_19], %44 {strides = array<i32>} : memref<1x128xf32, #tpu.memory_space<vmem>>, vector<1x128xf32>,
    return
  }
  func.func @transform_0(%arg0: i32) -> (i32, i32) {
    %c0_i32 = arith.constant 0 : i32
    %c0_i32_0 = arith.constant 0 : i32
    return %c0_i32, %arg0 : i32, i32
  }
  func.func @transform_1(%arg0: i32) -> (i32, i32) {
    %c0_i32 = arith.constant 0 : i32
    %c0_i32_0 = arith.constant 0 : i32
    return %c0_i32, %arg0 : i32, i32
  }
  func.func @transform_2(%arg0: i32) -> (i32, i32) {
    %c0_i32 = arith.constant 0 : i32
    %c0_i32_0 = arith.constant 0 : i32
    return %c0_i32, %arg0 : i32, i32
  }
  func.func @transform_3(%arg0: i32) -> (i32, i32) {
    %c0_i32 = arith.constant 0 : i32
    %c0_i32_0 = arith.constant 0 : i32
    return %c0_i32, %arg0 : i32, i32
  }
  func.func @transform_4(%arg0: i32) -> (i32, i32) {
    %c0_i32 = arith.constant 0 : i32
    %c0_i32_0 = arith.constant 0 : i32
    return %c0_i32, %arg0 : i32, i32
  }
  func.func @transform_5(%arg0: i32) -> (i32, i32) {
    %c0_i32 = arith.constant 0 : i32
    %c0_i32_0 = arith.constant 0 : i32
    return %c0_i32, %arg0 : i32, i32
  }
  func.func @transform_6(%arg0: i32) -> (i32, i32) {
    %c0_i32 = arith.constant 0 : i32
    %c0_i32_0 = arith.constant 0 : i32
    return %c0_i32, %arg0 : i32, i32
  }
  func.func @transform_7(%arg0: i32) -> (i32, i32) {
    %c0_i32 = arith.constant 0 : i32
    %c0_i32_0 = arith.constant 0 : i32
    return %c0_i32, %arg0 : i32, i32
  }
}

</mosaic_0001>

<bundles_post_ra>
// kernel: tpu_custom_call.1
= control target key start
LH: loop header
LB: loop body
LE: loop exit
PB: predicated region body
PF: predicated region fallthrough
CT: control target
= control target key end

     0   :  { %13 = vsyncpa [#allocation3], 0  ;;  %s451_s0 = inlined_call_operand.hbm [shape: f32[10,128], index: 0, kind: input, shape index: {}]   ;;  %s452_s1 = inlined_call_operand.hbm [shape: s32[1,128], index: 1, kind: input, shape index: {}]   ;;  %s453_s2 = inlined_call_operand.vmem [shape: f32[1,128], index: 2, kind: input, shape index: {}]   ;;  %s454_s3 = inlined_call_operand.hbm [shape: f32[15,128], index: 3, kind: input, shape index: {}]   ;;  %s455_s4 = inlined_call_operand.vmem [shape: s32[1,128], index: 4, kind: input, shape index: {}]   ;;  %s456_s5 = inlined_call_operand.vmem [shape: f32[1,128], index: 5, kind: input, shape index: {}]   ;;  %s457_s6 = inlined_call_operand.hbm [shape: f32[1,128], index: 6, kind: output, shape index: {0}]   ;;  %s458_s7 = inlined_call_operand.hbm [shape: f32[1,128], index: 7, kind: output, shape index: {1}]  }
   0x1   :  { %14 = vsyncpa [#allocation6], 0 }
   0x2   :  { %15 = vsyncpa [#allocation4], 0  ;;  %s35_s26 = sshll.u32 %s452_s1, 4  ;;  %s36_s26 = int_to_ptr.hbm [resolvable:$true] %s35_s26 }
   0x3   :  { %16 = vsyncpa [#allocation10], 0  ;;  %s363_s27 = smov [#allocation5]   ;;  %s21_s8 = sshll.u32 %s451_s0, 4  ;;  %s22_s8 = int_to_ptr.hbm [resolvable:$true] %s21_s8 }
   0x4   :  { %s37_s28 = sshll.u32 %s363_s27, 4  ;;  %s364_s9 = smov [#allocation2]   ;;  %s38_s28 = int_to_ptr.vmem [resolvable:$true] %s37_s28 }
   0x5   :  { %40 = dma.hbm_to_vmem [thread:$0]  %s36_s26, 16, %s38_s28, [#allocation6]  }
   0x6   :  { %s23_s10 = sshll.u32 %s364_s9, 4  ;;  %s365_s11 = smov 128   ;;  %s24_s10 = int_to_ptr.vmem [resolvable:$true] %s23_s10 }
   0x7   :  { %s366_s12 = smov 8   ;;  %s47_s1 = sshll.u32 %s454_s3, 4  ;;  %s48_s1 = int_to_ptr.hbm [resolvable:$true] %s47_s1 }
   0x8   :  { %29 = dma.hbm_to_vmem [thread:$0]  %s22_s8, 256, %s24_s10, [#allocation3], %s365_s11, %s365_s11, %s366_s12  }
   0x9   :  { %s367_s15 = smov [#allocation7]  }
   0xa   :  { %s49_s16 = sshll.u32 %s367_s15, 4  ;;  %s50_s16 = int_to_ptr.vmem [resolvable:$true] %s49_s16 }
   0xb   :  { %55 = dma.hbm_to_vmem [thread:$0]  %s48_s1, 256, %s50_s16, [#allocation6], %s365_s11, %s365_s11, %s366_s12  }
   0xc   :  { %355 = dma.done.wait [#allocation3], 256  }
   0xd   :  { %356 = vsyncadd [#allocation3], 4294967040 }
   0xe   :  { %357 = dma.done.wait [#allocation6], 272  }
   0xf   :  { %358 = vsyncadd [#allocation6], 4294967024  ;;  %vm76_vm0 = vcmask 1041408   ;;  %v72_v0 = vld [vmem:[#allocation2] sm:$0xff]  ;;  %v73_v1 = vld [vmem:[#allocation2 + $0x8] sm:$0x3]  ;;  %v102_v3 = vlaneseq }
  0x10   :  { %vm129_vm1 = vcmask 1046528   ;;  %v77_v2 = vsel %vm76_vm0, %v73_v1, -inf  ;;  %v125_v5 = vld [vmem:[#allocation7] sm:$0xff]  ;;  %v126_v6 = vld [vmem:[#allocation7 + $0x8] sm:$0x7f]  ;;  %v368_v26 = vmov 0.0  }
  0x11   :  { %v78_v4 = vmax.f32 %v72_v0, %v77_v2  ;;  %v130_v7 = vsel %vm129_vm1, %v126_v6, -inf  ;;  %v103_v10 = vshrl.u32 %v102_v3, 7  ;;  %v221_v16 = vld [vmem:[#allocation5] ss:$0 sm:$0xff]  ;;  %v222_v19 = vld [vmem:[%s455_s4] ss:$0 sm:$0xff] }
  0x12   :  { %v131_v9 = vmax.f32 %v125_v5, %v130_v7  ;;  %s369_s18 = smov [#allocation8]   ;;  %s182_s22 = sshll.u32 %s457_s6, 4  ;;  %s183_s22 = int_to_ptr.hbm [resolvable:$true] %s182_s22 }
  0x13   :  { %v79_v8 = vrot.slane %v78_v4, 4  ;;  %v104_v15 = vadd.s32 8, %v103_v10  ;;  %vm106_vm3 = vcmp.eq.s32.totalorder %v103_v10, %v221_v16  ;;  %vm156_vm5 = vcmp.eq.s32.totalorder %v103_v10, %v222_v19  ;;  %s180_s19 = sshll.u32 %s369_s18, 4  ;;  %s370_s25 = smov [#allocation9]   ;;  %s181_s19 = int_to_ptr.vmem [resolvable:$true] %s180_s19 }
  0x14   :  { %v132_v12 = vrot.slane %v131_v9, 4  ;;  %v209_v33 = vsel %vm106_vm3, 1.0, %v368_v26  ;;  %v211_v38 = vsel %vm156_vm5, 1.0, %v368_v26  ;;  %s191_s26 = sshll.u32 %s370_s25, 4  ;;  %s193_s29 = sshll.u32 %s458_s7, 4  ;;  %s192_s26 = int_to_ptr.vmem [resolvable:$true] %s191_s26  ;;  %s194_s29 = int_to_ptr.hbm [resolvable:$true] %s193_s29 }
  0x15   :  { %v80_v11 = vmax.f32 %v78_v4, %v79_v8  ;;  %vm107_vm2 = vcmp.eq.s32.totalorder %v104_v15, %v221_v16  ;;  %vm157_vm4 = vcmp.eq.s32.totalorder %v104_v15, %v222_v19  ;;  %v112_v40 = vmul.f32 %v209_v33, %v72_v0  ;;  %v75_v19 = vld [vmem:[%s453_s2] sm:$0x1] }
  0x16   :  { %v133_v14 = vmax.f32 %v131_v9, %v132_v12  ;;  %v210_v27 = vsel %vm107_vm2, 1.0, %v368_v26  ;;  %v212_v32 = vsel %vm157_vm4, 1.0, %v368_v26  ;;  %v162_v42 = vmul.f32 %v211_v38, %v125_v5 }
  0x17   :  { %v81_v13 = vrot.slane %v80_v11, 2  ;;  %v113_v34 = vmul.f32 %v210_v27, %v73_v1  ;;  %v163_v39 = vmul.f32 %v212_v32, %v126_v6 }
  0x18   :  { %v134_v18 = vrot.slane %v133_v14, 2 }
  0x19   :  { %v82_v17 = vmax.f32 %v80_v11, %v81_v13  ;;  %v114_v41 = vsel %vm76_vm0, %v113_v34, 0.0  ;;  %v164_v43 = vsel %vm129_vm1, %v163_v39, 0.0 }
  0x1a   :  { %v135_v21 = vmax.f32 %v133_v14, %v134_v18  ;;  %v115_v45 = vadd.f32 %v114_v41, %v112_v40  ;;  %v165_v49 = vadd.f32 %v164_v43, %v162_v42 }
  0x1b   :  { %v83_v20 = vrot.slane %v82_v17, 1 }
  0x1c   :  { %v136_v23 = vrot.slane %v135_v21, 1  ;;  %v116_v52 = vrot.slane %v115_v45, 4  ;;  %v166_v56 = vrot.slane %v165_v49, 4 }
  0x1d   :  { %v425_v22 = vmax.f32 %v82_v17, %v83_v20 }
  0x1e   :  { %v429_v28 = vmax.f32 %v135_v21, %v136_v23  ;;  %v117_v59 = vadd.f32 %v116_v52, %v115_v45  ;;  %v167_v62 = vadd.f32 %v166_v56, %v165_v49  ;;  %v128_v23 = vld [vmem:[%s456_s5] sm:$0x1] }
  0x1f   :  { %v85_v24 = vsub.f32 %v72_v0, %v425_v22  ;;  %v86_v25 = vsub.f32 %v73_v1, %v425_v22 }
  0x20   :  { %v138_v31 = vsub.f32 %v125_v5, %v429_v28  ;;  %v139_v35 = vsub.f32 %v126_v6, %v429_v28  ;;  %v118_v1 = vrot.slane %v117_v59, 2  ;;  %v168_v4 = vrot.slane %v167_v62, 2 }
  0x21   :  { %v87_v29 = vmul.f32 1.442695, %v85_v24  ;;  %v89_v30 = vmul.f32 1.442695, %v86_v25 }
  0x22   :  { %v140_v36 = vmul.f32 1.442695, %v138_v31  ;;  %v142_v37 = vmul.f32 1.442695, %v139_v35  ;;  %v119_v7 = vadd.f32 %v118_v1, %v117_v59  ;;  %v169_v9 = vadd.f32 %v168_v4, %v167_v62 }
  0x23   :  { %223 = vpow2.f32 %v87_v29 }
  0x24   :  { %225 = vpow2.f32 %v89_v30  ;;  %v120_v10 = vrot.slane %v119_v7, 1  ;;  %v170_v11 = vrot.slane %v169_v9, 1 }
  0x25   :  { %227 = vpow2.f32 %v140_v36 }
  0x26   :  { %229 = vpow2.f32 %v142_v37  ;;  %v121_v14 = vadd.f32 %v120_v10, %v119_v7  ;;  %v171_v18 = vadd.f32 %v170_v11, %v169_v9 }
  0x29   :  { %v224_v44 = vpop.eup %223 }
  0x2a   :  { %v226_v46 = vpop.eup %225 }
  0x2b   :  { %v228_v47 = vpop.eup %227  ;;  %v91_v48 = vsel %vm76_vm0, %v226_v46, 0.0 }
  0x2c   :  { %v230_v50 = vpop.eup %229  ;;  %v92_v51 = vadd.f32 %v224_v44, %v91_v48 }
  0x2d   :  { %v144_v53 = vsel %vm129_vm1, %v230_v50, 0.0 }
  0x2e   :  { %v93_v54 = vrot.slane %v92_v51, 4  ;;  %v145_v55 = vadd.f32 %v228_v47, %v144_v53 }
  0x30   :  { %v94_v57 = vadd.f32 %v93_v54, %v92_v51  ;;  %v146_v58 = vrot.slane %v145_v55, 4 }
  0x32   :  { %v95_v60 = vrot.slane %v94_v57, 2  ;;  %v147_v61 = vadd.f32 %v146_v58, %v145_v55 }
  0x34   :  { %v96_v63 = vadd.f32 %v95_v60, %v94_v57  ;;  %v148_v0 = vrot.slane %v147_v61, 2 }
  0x36   :  { %v97_v2 = vrot.slane %v96_v63, 1  ;;  %v149_v3 = vadd.f32 %v148_v0, %v147_v61 }
  0x38   :  { %v98_v5 = vadd.f32 %v97_v2, %v96_v63  ;;  %v150_v6 = vrot.slane %v149_v3, 1 }
  0x3a   :  { %231 = vlog2.f32 %v98_v5  ;;  %v151_v8 = vadd.f32 %v150_v6, %v149_v3 }
  0x3c   :  { %233 = vlog2.f32 %v151_v8 }
  0x40   :  { %v232_v12 = vpop.eup %231 }
  0x41   :  { %v100_v13 = vmul.f32 0.6931472, %v232_v12 }
  0x42   :  { %v234_v15 = vpop.eup %233 }
  0x43   :  { %v101_v16 = vadd.f32 %v100_v13, %v425_v22  ;;  %v153_v17 = vmul.f32 0.6931472, %v234_v15 }
  0x45   :  { %v122_v20 = vsub.f32 %v101_v16, %v121_v14  ;;  %v154_v21 = vadd.f32 %v153_v17, %v429_v28 }
  0x47   :  { %v123_v22 = vmul.f32 %v122_v20, %v75_v19  ;;  %v172_v24 = vsub.f32 %v154_v21, %v171_v18 }
  0x49   :  { %124 = vst [vmem:[#allocation8] sm:$0x1] %v123_v22  ;;  %v173_v25 = vmul.f32 %v172_v24, %v128_v23 }
  0x4a   :  { %185 = dma.vmem_to_hbm [thread:$0]  %s181_s19, 16, %s183_s22, [#allocation4]  }
  0x4b   :  { %174 = vst [vmem:[#allocation9] sm:$0x1] %v173_v25 }
  0x4c   :  { %196 = dma.vmem_to_hbm [thread:$0]  %s192_s26, 16, %s194_s29, [#allocation10]  }
  0x4d   :  { %359 = dma.done.wait [#allocation4], 16  }
  0x4e   :  { %360 = vsyncadd [#allocation4], 4294967280 }
  0x4f   :  { %361 = dma.done.wait [#allocation10], 16  }
  0x50   :  { %362 = vsyncadd [#allocation10], 4294967280 }
  0x51   :  { %205 = vsyncpa [#allocation3], 1 }
  0x52   :  { %206 = vsyncpa [#allocation6], 1 }
  0x53   :  { %207 = vsyncpa [#allocation4], 1 }
  0x54   :  { %208 = vsyncpa [#allocation10], 1 }

</bundles_post_ra>
